<compile_context>
chip_gen: v7x
topology: tpu7x:2x2x1
jax: 0.10.0
libtpu: 0.0.40
codegen_flags: <defaults>
</compile_context>

<pallas_src>
import functools

import jax
import jax.numpy as jnp
from jax.experimental import pallas as pl
from jax.experimental.pallas import tpu as pltpu


_MAX_ROWS_PER_STEP = 256   # review suggested 128-512; kernel is DMA-issue bound


def _make_fused_gather_kernel(rows_per_step: int, n_rel: int):
    G = rows_per_step

    def kernel(ent_ids_ref, rel_ids_ref,        # SMEM (scalar prefetch)
               ent_tab_ref, rel_tab_ref,        # HBM  (pl.ANY)
               ent_out_ref, rel_out_ref,        # HBM  (pl.ANY)
               sems):
        i = pl.program_id(0)
        base = i * G

        # Issue all G entity-row DMAs (HBM table row -> HBM output row) before
        # any wait: every copy of the block is in flight simultaneously and
        # every SMEM scalar id read happens before the first wait.
        ent_copies = []
        for g in range(G):                                    # static unroll
            row = ent_ids_ref[base + g]                       # SMEM scalar read
            cp = pltpu.make_async_copy(
                ent_tab_ref.at[pl.ds(row, 1)],                # (1, Dp) src row
                ent_out_ref.at[pl.ds(base + g, 1)],           # (1, Dp) dst row
                sems.at[0])
            cp.start()
            ent_copies.append(cp)

        # Relation gather is tiny (B rows): fused into this launch, done once
        # on grid step 0 with its own semaphore (row size may differ).
        @pl.when(i == 0)
        def _():
            rel_copies = []
            for r in range(n_rel):                            # static unroll
                rrow = rel_ids_ref[r]
                cp = pltpu.make_async_copy(
                    rel_tab_ref.at[pl.ds(rrow, 1)],
                    rel_out_ref.at[pl.ds(r, 1)],
                    sems.at[1])
                cp.start()
                rel_copies.append(cp)
            for cp in rel_copies:
                cp.wait()

        # Drain: all entity copies share sems[0] and have identical sizes, so
        # G per-copy waits exactly consume the G completions.  All copies are
        # complete before the body returns (nothing races step boundaries).
        for cp in ent_copies:
            cp.wait()

    return kernel


@functools.partial(jax.jit, static_argnames=("ent_dim", "rel_dim"))
def _fused_gather(ent_table_pad, rel_table_pad, ent_id_parts, rel_ids, *,
                  ent_dim, rel_dim):
    """index_select(ent_table, concat(ent_id_parts)) and index_select(rel_table, rel_ids)."""
    ent_ids = jnp.concatenate(
        [jnp.asarray(p, jnp.int32).reshape(-1) for p in ent_id_parts])
    rel_ids = jnp.asarray(rel_ids, jnp.int32).reshape(-1)

    n_ent = ent_ids.shape[0]
    n_rel = rel_ids.shape[0]
    Ne, Dpe = ent_table_pad.shape
    Nr, Dpr = rel_table_pad.shape

    G = min(_MAX_ROWS_PER_STEP, n_ent)
    num_blocks = -(-n_ent // G)
    n_pad = num_blocks * G

    # Clip so a bad id can never DMA outside the table (an OOB HBM DMA faults
    # the chip).  NOTE: diverges from torch.index_select, which raises on
    # out-of-range ids.
    ent_ids = jnp.clip(ent_ids, 0, Ne - 1)
    rel_ids = jnp.clip(rel_ids, 0, Nr - 1)
    if n_pad != n_ent:
        # Padded tail rows re-gather row 0 and are sliced off below.
        ent_ids = jnp.concatenate(
            [ent_ids, jnp.zeros((n_pad - n_ent,), jnp.int32)])

    itemsize = ent_table_pad.dtype.itemsize
    bytes_accessed = 2 * (n_pad * Dpe + n_rel * Dpr) * itemsize   # read + write

    ent_out, rel_out = pl.pallas_call(
        _make_fused_gather_kernel(G, n_rel),
        out_shape=(jax.ShapeDtypeStruct((n_pad, Dpe), ent_table_pad.dtype),
                   jax.ShapeDtypeStruct((n_rel, Dpr), rel_table_pad.dtype)),
        grid_spec=pltpu.PrefetchScalarGridSpec(
            num_scalar_prefetch=2,                       # ent_ids, rel_ids -> SMEM
            grid=(num_blocks,),
            in_specs=[pl.BlockSpec(memory_space=pl.ANY),   # entity table (HBM)
                      pl.BlockSpec(memory_space=pl.ANY)],  # relation table (HBM)
            out_specs=(pl.BlockSpec(memory_space=pl.ANY),  # gathered entity rows
                       pl.BlockSpec(memory_space=pl.ANY)), # gathered relation rows
            scratch_shapes=[pltpu.SemaphoreType.DMA((2,))],  # [entity, relation]
        ),
        compiler_params=pltpu.CompilerParams(
            dimension_semantics=("arbitrary",)),
        cost_estimate=pl.CostEstimate(
            flops=0, transcendentals=0, bytes_accessed=bytes_accessed),
    )(ent_ids, rel_ids, ent_table_pad, rel_table_pad)

    if (n_pad, Dpe) != (n_ent, ent_dim):
        ent_out = ent_out[:n_ent, :ent_dim]
    if Dpr != rel_dim:
        rel_out = rel_out[:, :rel_dim]
    return ent_out, rel_out


def _pad_lanes(x, multiple=128):
    d = x.shape[-1]
    d_pad = -(-d // multiple) * multiple
    if d_pad == d:
        return x
    return jnp.pad(x, ((0, 0), (0, d_pad - d)))


# ---------------------------------------------------------------------------
# KGEModel in JAX, parameters initialized deterministically in-script.
# ---------------------------------------------------------------------------
class KGEModel:
    def __init__(self, model_name, nentity, nrelation, hidden_dim, gamma,
                 double_entity_embedding=False, double_relation_embedding=False,
                 key=None):
        self.model_name = model_name
        self.nentity = nentity
        self.nrelation = nrelation
        self.hidden_dim = hidden_dim
        self.epsilon = 2.0
        self.gamma = jnp.array([gamma], dtype=jnp.float32)
        self.embedding_range = jnp.array(
            [(float(gamma) + self.epsilon) / hidden_dim], dtype=jnp.float32)
        self.entity_dim = hidden_dim * 2 if double_entity_embedding else hidden_dim
        self.relation_dim = hidden_dim * 2 if double_relation_embedding else hidden_dim

        if key is None:
            key = jax.random.PRNGKey(0)
        k_ent, k_rel = jax.random.split(key)
        r = float(self.embedding_range[0])
        self.entity_embedding = jax.random.uniform(
            k_ent, (nentity, self.entity_dim), minval=-r, maxval=r,
            dtype=jnp.float32)
        # Matches the reference: relation table has nrelation + 1 rows.
        self.relation_embedding = jax.random.uniform(
            k_rel, (nrelation + 1, self.relation_dim), minval=-r, maxval=r,
            dtype=jnp.float32)

        # Lane-padded (multiple-of-128 last dim) table views so every row DMA
        # is a full, tile-lane-aligned row.  No-op copy when the dim is
        # already a multiple of 128 (recommended for real models, which also
        # removes the post-kernel column slice).
        self._entity_table_pad = _pad_lanes(self.entity_embedding)
        self._relation_table_pad = _pad_lanes(self.relation_embedding)

    # -- gather helpers -----------------------------------------------------
    def _gather(self, ent_id_parts, rel_ids):
        return _fused_gather(self._entity_table_pad, self._relation_table_pad,
                             tuple(ent_id_parts), rel_ids,
                             ent_dim=self.entity_dim, rel_dim=self.relation_dim)

    def get_ent_embeddings(self, ids):
        ent, _ = self._gather((jnp.asarray(ids, jnp.int32),),
                              jnp.zeros((1,), jnp.int32))   # dummy 1-row rel gather
        return ent

    # -- forward path -------------------------------------------------------
    def get_sample_embeddings(self, sample, mode):
        if mode == 'single':
            batch_size = sample.shape[0]
            ent, rel = self._gather((sample[:, 0], sample[:, 2]), sample[:, 1])
            head = ent[:batch_size].reshape(batch_size, 1, -1)
            tail = ent[batch_size:].reshape(batch_size, 1, -1)
            relation = rel.reshape(batch_size, 1, -1)
        elif mode == 'head-batch':
            tail_part, head_part = sample
            batch_size, negative_sample_size = head_part.shape
            ent, rel = self._gather((head_part.reshape(-1), tail_part[:, 2]),
                                    tail_part[:, 1])
            n_neg_total = batch_size * negative_sample_size
            head = ent[:n_neg_total].reshape(batch_size, negative_sample_size, -1)
            tail = ent[n_neg_total:].reshape(batch_size, 1, -1)
            relation = rel.reshape(batch_size, 1, -1)
        elif mode == 'tail-batch':
            head_part, tail_part = sample
            batch_size, negative_sample_size = tail_part.shape
            ent, rel = self._gather((head_part[:, 0], tail_part.reshape(-1)),
                                    head_part[:, 1])
            head = ent[:batch_size].reshape(batch_size, 1, -1)
            tail = ent[batch_size:].reshape(batch_size, negative_sample_size, -1)
            relation = rel.reshape(batch_size, 1, -1)
        else:
            raise ValueError('mode %s not supported' % mode)
        return head, relation, tail

    def scoring(self, head, relation, tail, mode):
        # TODO(synk): abstract in the reference base class; concrete subclasses
        # (TransE/RotatE/...) should be fused into the gather kernel.
        raise NotImplementedError

    def forward(self, sample, mode='single'):
        head, relation, tail = self.get_sample_embeddings(sample, mode)
        # Base-class forward would call self.scoring(...), which is abstract;
        # return the gathered embeddings (the implemented compute).
        return head, relation, tail


# ---------------------------------------------------------------------------
if __name__ == "__main__":
    nentity, nrelation, hidden_dim, gamma = 32, 8, 32, 12.0
    batch, n_neg = 4, 8

    model = KGEModel("Base", nentity, nrelation, hidden_dim, gamma,
                     key=jax.random.PRNGKey(0))

    key = jax.random.PRNGKey(0)
    k1, k2, k3, k4, k5, k6 = jax.random.split(key, 6)

    # 'single' mode sample: (B, 3) = (head_id, relation_id, tail_id)
    heads = jax.random.randint(k1, (batch, 1), 0, nentity, dtype=jnp.int32)
    rels = jax.random.randint(k2, (batch, 1), 0, nrelation + 1, dtype=jnp.int32)
    tails = jax.random.randint(k3, (batch, 1), 0, nentity, dtype=jnp.int32)
    pos = jnp.concatenate([heads, rels, tails], axis=1)

    ent_tab, rel_tab = model.entity_embedding, model.relation_embedding

    # --- single mode
    h, r, t = model.forward(pos, mode='single')
    jax.block_until_ready((h, r, t))
    h_ref = jnp.take(ent_tab, pos[:, 0], axis=0)[:, None, :]
    r_ref = jnp.take(rel_tab, pos[:, 1], axis=0)[:, None, :]
    t_ref = jnp.take(ent_tab, pos[:, 2], axis=0)[:, None, :]
    assert h.shape == (batch, 1, hidden_dim)
    assert jnp.allclose(h, h_ref) and jnp.allclose(r, r_ref) and jnp.allclose(t, t_ref)

    # --- head-batch mode: (positive triples, negative head ids)
    neg_heads = jax.random.randint(k4, (batch, n_neg), 0, nentity, dtype=jnp.int32)
    hb_h, hb_r, hb_t = model.forward((pos, neg_heads), mode='head-batch')
    jax.block_until_ready((hb_h, hb_r, hb_t))
    assert hb_h.shape == (batch, n_neg, hidden_dim)
    assert jnp.allclose(
        hb_h, jnp.take(ent_tab, neg_heads.reshape(-1), axis=0
                       ).reshape(batch, n_neg, hidden_dim))
    assert jnp.allclose(hb_r, r_ref)
    assert jnp.allclose(hb_t, t_ref)

    # --- tail-batch mode: (positive triples, negative tail ids)
    neg_tails = jax.random.randint(k5, (batch, n_neg), 0, nentity, dtype=jnp.int32)
    tb_h, tb_r, tb_t = model.forward((pos, neg_tails), mode='tail-batch')
    jax.block_until_ready((tb_h, tb_r, tb_t))
    assert tb_t.shape == (batch, n_neg, hidden_dim)
    assert jnp.allclose(
        tb_t, jnp.take(ent_tab, neg_tails.reshape(-1), axis=0
                       ).reshape(batch, n_neg, hidden_dim))
    assert jnp.allclose(tb_h, h_ref)
    assert jnp.allclose(tb_r, r_ref)

    # --- multi-block gather path (num_blocks > 1, padded tail rows)
    big_ids = jax.random.randint(k6, (600,), 0, nentity, dtype=jnp.int32)
    big = model.get_ent_embeddings(big_ids)
    jax.block_until_ready(big)
    assert big.shape == (600, hidden_dim)
    assert jnp.allclose(big, jnp.take(ent_tab, big_ids, axis=0))

    print("KERNEL_OK")
</pallas_src>

<mosaic_0001>
module attributes {stable_mosaic.version = 11 : i64} {
  func.func @kernel(%arg0: i32, %arg1: memref<8xi32, #tpu.memory_space<smem>>, %arg2: memref<4xi32, #tpu.memory_space<smem>>, %arg3: memref<32x128xf32, #tpu.memory_space<any>>, %arg4: memref<9x128xf32, #tpu.memory_space<any>>, %arg5: memref<8x128xf32, #tpu.memory_space<any>>, %arg6: memref<4x128xf32, #tpu.memory_space<any>>, %arg7: memref<2x!tpu.dma_semaphore, #tpu.memory_space<semaphore_mem>>) attributes {dimension_semantics = [#tpu.dimension_semantics<arbitrary>], iteration_bounds = array<i64: 1>, scalar_prefetch = 2 : i64, scratch_operands = 1 : i64, tpu.core_type = #tpu.core_type<tc>, window_params = [{}, {}, {}, {}]} {
    %c8_i32 = arith.constant 8 : i32
    %0 = arith.muli %arg0, %c8_i32 : i32
    %c0_i32 = arith.constant 0 : i32
    %1 = arith.addi %0, %c0_i32 : i32
    %2 = arith.index_cast %1 : i32 to index
    %3 = memref.load %arg1[%2] : memref<8xi32, #tpu.memory_space<smem>>
    %c0_i32_0 = arith.constant 0 : i32
    %4 = arith.addi %0, %c0_i32_0 : i32
    %c0_i32_1 = arith.constant 0 : i32
    %c0_i32_2 = arith.constant 0 : i32
    %5 = tpu.memref_slice %arg3[%3, %c0_i32_2] : memref<32x128xf32, #tpu.memory_space<any>> -> memref<1x128xf32, #tpu.memory_space<any>>
    %c0_i32_3 = arith.constant 0 : i32
    %6 = tpu.memref_slice %arg5[%4, %c0_i32_3] : memref<8x128xf32, #tpu.memory_space<any>> -> memref<1x128xf32, #tpu.memory_space<any>>
    %7 = tpu.memref_slice %arg7[%c0_i32_1] : memref<2x!tpu.dma_semaphore, #tpu.memory_space<semaphore_mem>> -> memref<1x!tpu.dma_semaphore, #tpu.memory_space<semaphore_mem>>
    %8 = tpu.memref_squeeze %7 : memref<1x!tpu.dma_semaphore, #tpu.memory_space<semaphore_mem>> -> memref<!tpu.dma_semaphore, #tpu.memory_space<semaphore_mem>>
    tpu.enqueue_dma source(%5 : memref<1x128xf32, #tpu.memory_space<any>>) target(%6 : memref<1x128xf32, #tpu.memory_space<any>>) target_semaphore(%8 : memref<!tpu.dma_semaphore, #tpu.memory_space<semaphore_mem>>)
    %c1_i32 = arith.constant 1 : i32
    %9 = arith.addi %0, %c1_i32 : i32
    %10 = arith.index_cast %9 : i32 to index
    %11 = memref.load %arg1[%10] : memref<8xi32, #tpu.memory_space<smem>>
    %c1_i32_4 = arith.constant 1 : i32
    %12 = arith.addi %0, %c1_i32_4 : i32
    %c0_i32_5 = arith.constant 0 : i32
    %c0_i32_6 = arith.constant 0 : i32
    %13 = tpu.memref_slice %arg3[%11, %c0_i32_6] : memref<32x128xf32, #tpu.memory_space<any>> -> memref<1x128xf32, #tpu.memory_space<any>>
    %c0_i32_7 = arith.constant 0 : i32
    %14 = tpu.memref_slice %arg5[%12, %c0_i32_7] : memref<8x128xf32, #tpu.memory_space<any>> -> memref<1x128xf32, #tpu.memory_space<any>>
    %15 = tpu.memref_slice %arg7[%c0_i32_5] : memref<2x!tpu.dma_semaphore, #tpu.memory_space<semaphore_mem>> -> memref<1x!tpu.dma_semaphore, #tpu.memory_space<semaphore_mem>>
    %16 = tpu.memref_squeeze %15 : memref<1x!tpu.dma_semaphore, #tpu.memory_space<semaphore_mem>> -> memref<!tpu.dma_semaphore, #tpu.memory_space<semaphore_mem>>
    tpu.enqueue_dma source(%13 : memref<1x128xf32, #tpu.memory_space<any>>) target(%14 : memref<1x128xf32, #tpu.memory_space<any>>) target_semaphore(%16 : memref<!tpu.dma_semaphore, #tpu.memory_space<semaphore_mem>>)
    %c2_i32 = arith.constant 2 : i32
    %17 = arith.addi %0, %c2_i32 : i32
    %18 = arith.index_cast %17 : i32 to index
    %19 = memref.load %arg1[%18] : memref<8xi32, #tpu.memory_space<smem>>
    %c2_i32_8 = arith.constant 2 : i32
    %20 = arith.addi %0, %c2_i32_8 : i32
    %c0_i32_9 = arith.constant 0 : i32
    %c0_i32_10 = arith.constant 0 : i32
    %21 = tpu.memref_slice %arg3[%19, %c0_i32_10] : memref<32x128xf32, #tpu.memory_space<any>> -> memref<1x128xf32, #tpu.memory_space<any>>
    %c0_i32_11 = arith.constant 0 : i32
    %22 = tpu.memref_slice %arg5[%20, %c0_i32_11] : memref<8x128xf32, #tpu.memory_space<any>> -> memref<1x128xf32, #tpu.memory_space<any>>
    %23 = tpu.memref_slice %arg7[%c0_i32_9] : memref<2x!tpu.dma_semaphore, #tpu.memory_space<semaphore_mem>> -> memref<1x!tpu.dma_semaphore, #tpu.memory_space<semaphore_mem>>
    %24 = tpu.memref_squeeze %23 : memref<1x!tpu.dma_semaphore, #tpu.memory_space<semaphore_mem>> -> memref<!tpu.dma_semaphore, #tpu.memory_space<semaphore_mem>>
    tpu.enqueue_dma source(%21 : memref<1x128xf32, #tpu.memory_space<any>>) target(%22 : memref<1x128xf32, #tpu.memory_space<any>>) target_semaphore(%24 : memref<!tpu.dma_semaphore, #tpu.memory_space<semaphore_mem>>)
    %c3_i32 = arith.constant 3 : i32
    %25 = arith.addi %0, %c3_i32 : i32
    %26 = arith.index_cast %25 : i32 to index
    %27 = memref.load %arg1[%26] : memref<8xi32, #tpu.memory_space<smem>>
    %c3_i32_12 = arith.constant 3 : i32
    %28 = arith.addi %0, %c3_i32_12 : i32
    %c0_i32_13 = arith.constant 0 : i32
    %c0_i32_14 = arith.constant 0 : i32
    %29 = tpu.memref_slice %arg3[%27, %c0_i32_14] : memref<32x128xf32, #tpu.memory_space<any>> -> memref<1x128xf32, #tpu.memory_space<any>>
    %c0_i32_15 = arith.constant 0 : i32
    %30 = tpu.memref_slice %arg5[%28, %c0_i32_15] : memref<8x128xf32, #tpu.memory_space<any>> -> memref<1x128xf32, #tpu.memory_space<any>>
    %31 = tpu.memref_slice %arg7[%c0_i32_13] : memref<2x!tpu.dma_semaphore, #tpu.memory_space<semaphore_mem>> -> memref<1x!tpu.dma_semaphore, #tpu.memory_space<semaphore_mem>>
    %32 = tpu.memref_squeeze %31 : memref<1x!tpu.dma_semaphore, #tpu.memory_space<semaphore_mem>> -> memref<!tpu.dma_semaphore, #tpu.memory_space<semaphore_mem>>
    tpu.enqueue_dma source(%29 : memref<1x128xf32, #tpu.memory_space<any>>) target(%30 : memref<1x128xf32, #tpu.memory_space<any>>) target_semaphore(%32 : memref<!tpu.dma_semaphore, #tpu.memory_space<semaphore_mem>>)
    %c4_i32 = arith.constant 4 : i32
    %33 = arith.addi %0, %c4_i32 : i32
    %34 = arith.index_cast %33 : i32 to index
    %35 = memref.load %arg1[%34] : memref<8xi32, #tpu.memory_space<smem>>
    %c4_i32_16 = arith.constant 4 : i32
    %36 = arith.addi %0, %c4_i32_16 : i32
    %c0_i32_17 = arith.constant 0 : i32
    %c0_i32_18 = arith.constant 0 : i32
    %37 = tpu.memref_slice %arg3[%35, %c0_i32_18] : memref<32x128xf32, #tpu.memory_space<any>> -> memref<1x128xf32, #tpu.memory_space<any>>
    %c0_i32_19 = arith.constant 0 : i32
    %38 = tpu.memref_slice %arg5[%36, %c0_i32_19] : memref<8x128xf32, #tpu.memory_space<any>> -> memref<1x128xf32, #tpu.memory_space<any>>
    %39 = tpu.memref_slice %arg7[%c0_i32_17] : memref<2x!tpu.dma_semaphore, #tpu.memory_space<semaphore_mem>> -> memref<1x!tpu.dma_semaphore, #tpu.memory_space<semaphore_mem>>
    %40 = tpu.memref_squeeze %39 : memref<1x!tpu.dma_semaphore, #tpu.memory_space<semaphore_mem>> -> memref<!tpu.dma_semaphore, #tpu.memory_space<semaphore_mem>>
    tpu.enqueue_dma source(%37 : memref<1x128xf32, #tpu.memory_space<any>>) target(%38 : memref<1x128xf32, #tpu.memory_space<any>>) target_semaphore(%40 : memref<!tpu.dma_semaphore, #tpu.memory_space<semaphore_mem>>)
    %c5_i32 = arith.constant 5 : i32
    %41 = arith.addi %0, %c5_i32 : i32
    %42 = arith.index_cast %41 : i32 to index
    %43 = memref.load %arg1[%42] : memref<8xi32, #tpu.memory_space<smem>>
    %c5_i32_20 = arith.constant 5 : i32
    %44 = arith.addi %0, %c5_i32_20 : i32
    %c0_i32_21 = arith.constant 0 : i32
    %c0_i32_22 = arith.constant 0 : i32
    %45 = tpu.memref_slice %arg3[%43, %c0_i32_22] : memref<32x128xf32, #tpu.memory_space<any>> -> memref<1x128xf32, #tpu.memory_space<any>>
    %c0_i32_23 = arith.constant 0 : i32
    %46 = tpu.memref_slice %arg5[%44, %c0_i32_23] : memref<8x128xf32, #tpu.memory_space<any>> -> memref<1x128xf32, #tpu.memory_space<any>>
    %47 = tpu.memref_slice %arg7[%c0_i32_21] : memref<2x!tpu.dma_semaphore, #tpu.memory_space<semaphore_mem>> -> memref<1x!tpu.dma_semaphore, #tpu.memory_space<semaphore_mem>>
    %48 = tpu.memref_squeeze %47 : memref<1x!tpu.dma_semaphore, #tpu.memory_space<semaphore_mem>> -> memref<!tpu.dma_semaphore, #tpu.memory_space<semaphore_mem>>
    tpu.enqueue_dma source(%45 : memref<1x128xf32, #tpu.memory_space<any>>) target(%46 : memref<1x128xf32, #tpu.memory_space<any>>) target_semaphore(%48 : memref<!tpu.dma_semaphore, #tpu.memory_space<semaphore_mem>>)
    %c6_i32 = arith.constant 6 : i32
    %49 = arith.addi %0, %c6_i32 : i32
    %50 = arith.index_cast %49 : i32 to index
    %51 = memref.load %arg1[%50] : memref<8xi32, #tpu.memory_space<smem>>
    %c6_i32_24 = arith.constant 6 : i32
    %52 = arith.addi %0, %c6_i32_24 : i32
    %c0_i32_25 = arith.constant 0 : i32
    %c0_i32_26 = arith.constant 0 : i32
    %53 = tpu.memref_slice %arg3[%51, %c0_i32_26] : memref<32x128xf32, #tpu.memory_space<any>> -> memref<1x128xf32, #tpu.memory_space<any>>
    %c0_i32_27 = arith.constant 0 : i32
    %54 = tpu.memref_slice %arg5[%52, %c0_i32_27] : memref<8x128xf32, #tpu.memory_space<any>> -> memref<1x128xf32, #tpu.memory_space<any>>
    %55 = tpu.memref_slice %arg7[%c0_i32_25] : memref<2x!tpu.dma_semaphore, #tpu.memory_space<semaphore_mem>> -> memref<1x!tpu.dma_semaphore, #tpu.memory_space<semaphore_mem>>
    %56 = tpu.memref_squeeze %55 : memref<1x!tpu.dma_semaphore, #tpu.memory_space<semaphore_mem>> -> memref<!tpu.dma_semaphore, #tpu.memory_space<semaphore_mem>>
    tpu.enqueue_dma source(%53 : memref<1x128xf32, #tpu.memory_space<any>>) target(%54 : memref<1x128xf32, #tpu.memory_space<any>>) target_semaphore(%56 : memref<!tpu.dma_semaphore, #tpu.memory_space<semaphore_mem>>)
    %c7_i32 = arith.constant 7 : i32
    %57 = arith.addi %0, %c7_i32 : i32
    %58 = arith.index_cast %57 : i32 to index
    %59 = memref.load %arg1[%58] : memref<8xi32, #tpu.memory_space<smem>>
    %c7_i32_28 = arith.constant 7 : i32
    %60 = arith.addi %0, %c7_i32_28 : i32
    %c0_i32_29 = arith.constant 0 : i32
    %c0_i32_30 = arith.constant 0 : i32
    %61 = tpu.memref_slice %arg3[%59, %c0_i32_30] : memref<32x128xf32, #tpu.memory_space<any>> -> memref<1x128xf32, #tpu.memory_space<any>>
    %c0_i32_31 = arith.constant 0 : i32
    %62 = tpu.memref_slice %arg5[%60, %c0_i32_31] : memref<8x128xf32, #tpu.memory_space<any>> -> memref<1x128xf32, #tpu.memory_space<any>>
    %63 = tpu.memref_slice %arg7[%c0_i32_29] : memref<2x!tpu.dma_semaphore, #tpu.memory_space<semaphore_mem>> -> memref<1x!tpu.dma_semaphore, #tpu.memory_space<semaphore_mem>>
    %64 = tpu.memref_squeeze %63 : memref<1x!tpu.dma_semaphore, #tpu.memory_space<semaphore_mem>> -> memref<!tpu.dma_semaphore, #tpu.memory_space<semaphore_mem>>
    tpu.enqueue_dma source(%61 : memref<1x128xf32, #tpu.memory_space<any>>) target(%62 : memref<1x128xf32, #tpu.memory_space<any>>) target_semaphore(%64 : memref<!tpu.dma_semaphore, #tpu.memory_space<semaphore_mem>>)
    %c0_i32_32 = arith.constant 0 : i32
    %65 = arith.cmpi eq, %arg0, %c0_i32_32 : i32
    %66 = arith.extui %65 : i1 to i32
    %c0_i32_33 = arith.constant 0 : i32
    %67 = arith.cmpi ne, %66, %c0_i32_33 : i32
    scf.if %67 {
      %c0 = arith.constant 0 : index
      %100 = memref.load %arg2[%c0] : memref<4xi32, #tpu.memory_space<smem>>
      %c1_i32_58 = arith.constant 1 : i32
      %c0_i32_59 = arith.constant 0 : i32
      %101 = tpu.memref_slice %arg4[%100, %c0_i32_59] : memref<9x128xf32, #tpu.memory_space<any>> -> memref<1x128xf32, #tpu.memory_space<any>>
      %c0_i32_60 = arith.constant 0 : i32
      %c0_i32_61 = arith.constant 0 : i32
      %102 = tpu.memref_slice %arg6[%c0_i32_60, %c0_i32_61] : memref<4x128xf32, #tpu.memory_space<any>> -> memref<1x128xf32, #tpu.memory_space<any>>
      %103 = tpu.memref_slice %arg7[%c1_i32_58] : memref<2x!tpu.dma_semaphore, #tpu.memory_space<semaphore_mem>> -> memref<1x!tpu.dma_semaphore, #tpu.memory_space<semaphore_mem>>
      %104 = tpu.memref_squeeze %103 : memref<1x!tpu.dma_semaphore, #tpu.memory_space<semaphore_mem>> -> memref<!tpu.dma_semaphore, #tpu.memory_space<semaphore_mem>>
      tpu.enqueue_dma source(%101 : memref<1x128xf32, #tpu.memory_space<any>>) target(%102 : memref<1x128xf32, #tpu.memory_space<any>>) target_semaphore(%104 : memref<!tpu.dma_semaphore, #tpu.memory_space<semaphore_mem>>)
      %c1 = arith.constant 1 : index
      %105 = memref.load %arg2[%c1] : memref<4xi32, #tpu.memory_space<smem>>
      %c1_i32_62 = arith.constant 1 : i32
      %c0_i32_63 = arith.constant 0 : i32
      %106 = tpu.memref_slice %arg4[%105, %c0_i32_63] : memref<9x128xf32, #tpu.memory_space<any>> -> memref<1x128xf32, #tpu.memory_space<any>>
      %c1_i32_64 = arith.constant 1 : i32
      %c0_i32_65 = arith.constant 0 : i32
      %107 = tpu.memref_slice %arg6[%c1_i32_64, %c0_i32_65] : memref<4x128xf32, #tpu.memory_space<any>> -> memref<1x128xf32, #tpu.memory_space<any>>
      %108 = tpu.memref_slice %arg7[%c1_i32_62] : memref<2x!tpu.dma_semaphore, #tpu.memory_space<semaphore_mem>> -> memref<1x!tpu.dma_semaphore, #tpu.memory_space<semaphore_mem>>
      %109 = tpu.memref_squeeze %108 : memref<1x!tpu.dma_semaphore, #tpu.memory_space<semaphore_mem>> -> memref<!tpu.dma_semaphore, #tpu.memory_space<semaphore_mem>>
      tpu.enqueue_dma source(%106 : memref<1x128xf32, #tpu.memory_space<any>>) target(%107 : memref<1x128xf32, #tpu.memory_space<any>>) target_semaphore(%109 : memref<!tpu.dma_semaphore, #tpu.memory_space<semaphore_mem>>)
      %c2 = arith.constant 2 : index
      %110 = memref.load %arg2[%c2] : memref<4xi32, #tpu.memory_space<smem>>
      %c1_i32_66 = arith.constant 1 : i32
      %c0_i32_67 = arith.constant 0 : i32
      %111 = tpu.memref_slice %arg4[%110, %c0_i32_67] : memref<9x128xf32, #tpu.memory_space<any>> -> memref<1x128xf32, #tpu.memory_space<any>>
      %c2_i32_68 = arith.constant 2 : i32
      %c0_i32_69 = arith.constant 0 : i32
      %112 = tpu.memref_slice %arg6[%c2_i32_68, %c0_i32_69] : memref<4x128xf32, #tpu.memory_space<any>> -> memref<1x128xf32, #tpu.memory_space<any>>
      %113 = tpu.memref_slice %arg7[%c1_i32_66] : memref<2x!tpu.dma_semaphore, #tpu.memory_space<semaphore_mem>> -> memref<1x!tpu.dma_semaphore, #tpu.memory_space<semaphore_mem>>
      %114 = tpu.memref_squeeze %113 : memref<1x!tpu.dma_semaphore, #tpu.memory_space<semaphore_mem>> -> memref<!tpu.dma_semaphore, #tpu.memory_space<semaphore_mem>>
      tpu.enqueue_dma source(%111 : memref<1x128xf32, #tpu.memory_space<any>>) target(%112 : memref<1x128xf32, #tpu.memory_space<any>>) target_semaphore(%114 : memref<!tpu.dma_semaphore, #tpu.memory_space<semaphore_mem>>)
      %c3 = arith.constant 3 : index
      %115 = memref.load %arg2[%c3] : memref<4xi32, #tpu.memory_space<smem>>
      %c1_i32_70 = arith.constant 1 : i32
      %c0_i32_71 = arith.constant 0 : i32
      %116 = tpu.memref_slice %arg4[%115, %c0_i32_71] : memref<9x128xf32, #tpu.memory_space<any>> -> memref<1x128xf32, #tpu.memory_space<any>>
      %c3_i32_72 = arith.constant 3 : i32
      %c0_i32_73 = arith.constant 0 : i32
      %117 = tpu.memref_slice %arg6[%c3_i32_72, %c0_i32_73] : memref<4x128xf32, #tpu.memory_space<any>> -> memref<1x128xf32, #tpu.memory_space<any>>
      %118 = tpu.memref_slice %arg7[%c1_i32_70] : memref<2x!tpu.dma_semaphore, #tpu.memory_space<semaphore_mem>> -> memref<1x!tpu.dma_semaphore, #tpu.memory_space<semaphore_mem>>
      %119 = tpu.memref_squeeze %118 : memref<1x!tpu.dma_semaphore, #tpu.memory_space<semaphore_mem>> -> memref<!tpu.dma_semaphore, #tpu.memory_space<semaphore_mem>>
      tpu.enqueue_dma source(%116 : memref<1x128xf32, #tpu.memory_space<any>>) target(%117 : memref<1x128xf32, #tpu.memory_space<any>>) target_semaphore(%119 : memref<!tpu.dma_semaphore, #tpu.memory_space<semaphore_mem>>)
      %c1_i32_74 = arith.constant 1 : i32
      %c0_i32_75 = arith.constant 0 : i32
      %120 = tpu.memref_slice %arg4[%100, %c0_i32_75] : memref<9x128xf32, #tpu.memory_space<any>> -> memref<1x128xf32, #tpu.memory_space<any>>
      %c0_i32_76 = arith.constant 0 : i32
      %c0_i32_77 = arith.constant 0 : i32
      %121 = tpu.memref_slice %arg6[%c0_i32_76, %c0_i32_77] : memref<4x128xf32, #tpu.memory_space<any>> -> memref<1x128xf32, #tpu.memory_space<any>>
      %122 = tpu.memref_slice %arg7[%c1_i32_74] : memref<2x!tpu.dma_semaphore, #tpu.memory_space<semaphore_mem>> -> memref<1x!tpu.dma_semaphore, #tpu.memory_space<semaphore_mem>>
      %123 = tpu.memref_squeeze %122 : memref<1x!tpu.dma_semaphore, #tpu.memory_space<semaphore_mem>> -> memref<!tpu.dma_semaphore, #tpu.memory_space<semaphore_mem>>
      tpu.wait_dma2 semaphore(%123 : memref<!tpu.dma_semaphore, #tpu.memory_space<semaphore_mem>>) src(%120 : memref<1x128xf32, #tpu.memory_space<any>>) dst(%121 : memref<1x128xf32, #tpu.memory_space<any>>)
      %c1_i32_78 = arith.constant 1 : i32
      %c0_i32_79 = arith.constant 0 : i32
      %124 = tpu.memref_slice %arg4[%105, %c0_i32_79] : memref<9x128xf32, #tpu.memory_space<any>> -> memref<1x128xf32, #tpu.memory_space<any>>
      %c1_i32_80 = arith.constant 1 : i32
      %c0_i32_81 = arith.constant 0 : i32
      %125 = tpu.memref_slice %arg6[%c1_i32_80, %c0_i32_81] : memref<4x128xf32, #tpu.memory_space<any>> -> memref<1x128xf32, #tpu.memory_space<any>>
      %126 = tpu.memref_slice %arg7[%c1_i32_78] : memref<2x!tpu.dma_semaphore, #tpu.memory_space<semaphore_mem>> -> memref<1x!tpu.dma_semaphore, #tpu.memory_space<semaphore_mem>>
      %127 = tpu.memref_squeeze %126 : memref<1x!tpu.dma_semaphore, #tpu.memory_space<semaphore_mem>> -> memref<!tpu.dma_semaphore, #tpu.memory_space<semaphore_mem>>
      tpu.wait_dma2 semaphore(%127 : memref<!tpu.dma_semaphore, #tpu.memory_space<semaphore_mem>>) src(%124 : memref<1x128xf32, #tpu.memory_space<any>>) dst(%125 : memref<1x128xf32, #tpu.memory_space<any>>)
      %c1_i32_82 = arith.constant 1 : i32
      %c0_i32_83 = arith.constant 0 : i32
      %128 = tpu.memref_slice %arg4[%110, %c0_i32_83] : memref<9x128xf32, #tpu.memory_space<any>> -> memref<1x128xf32, #tpu.memory_space<any>>
      %c2_i32_84 = arith.constant 2 : i32
      %c0_i32_85 = arith.constant 0 : i32
      %129 = tpu.memref_slice %arg6[%c2_i32_84, %c0_i32_85] : memref<4x128xf32, #tpu.memory_space<any>> -> memref<1x128xf32, #tpu.memory_space<any>>
      %130 = tpu.memref_slice %arg7[%c1_i32_82] : memref<2x!tpu.dma_semaphore, #tpu.memory_space<semaphore_mem>> -> memref<1x!tpu.dma_semaphore, #tpu.memory_space<semaphore_mem>>
      %131 = tpu.memref_squeeze %130 : memref<1x!tpu.dma_semaphore, #tpu.memory_space<semaphore_mem>> -> memref<!tpu.dma_semaphore, #tpu.memory_space<semaphore_mem>>
      tpu.wait_dma2 semaphore(%131 : memref<!tpu.dma_semaphore, #tpu.memory_space<semaphore_mem>>) src(%128 : memref<1x128xf32, #tpu.memory_space<any>>) dst(%129 : memref<1x128xf32, #tpu.memory_space<any>>)
      %c1_i32_86 = arith.constant 1 : i32
      %c0_i32_87 = arith.constant 0 : i32
      %132 = tpu.memref_slice %arg4[%115, %c0_i32_87] : memref<9x128xf32, #tpu.memory_space<any>> -> memref<1x128xf32, #tpu.memory_space<any>>
      %c3_i32_88 = arith.constant 3 : i32
      %c0_i32_89 = arith.constant 0 : i32
      %133 = tpu.memref_slice %arg6[%c3_i32_88, %c0_i32_89] : memref<4x128xf32, #tpu.memory_space<any>> -> memref<1x128xf32, #tpu.memory_space<any>>
      %134 = tpu.memref_slice %arg7[%c1_i32_86] : memref<2x!tpu.dma_semaphore, #tpu.memory_space<semaphore_mem>> -> memref<1x!tpu.dma_semaphore, #tpu.memory_space<semaphore_mem>>
      %135 = tpu.memref_squeeze %134 : memref<1x!tpu.dma_semaphore, #tpu.memory_space<semaphore_mem>> -> memref<!tpu.dma_semaphore, #tpu.memory_space<semaphore_mem>>
      tpu.wait_dma2 semaphore(%135 : memref<!tpu.dma_semaphore, #tpu.memory_space<semaphore_mem>>) src(%132 : memref<1x128xf32, #tpu.memory_space<any>>) dst(%133 : memref<1x128xf32, #tpu.memory_space<any>>)
    } else {
    }
    %c0_i32_34 = arith.constant 0 : i32
    %c0_i32_35 = arith.constant 0 : i32
    %68 = tpu.memref_slice %arg3[%3, %c0_i32_35] : memref<32x128xf32, #tpu.memory_space<any>> -> memref<1x128xf32, #tpu.memory_space<any>>
    %c0_i32_36 = arith.constant 0 : i32
    %69 = tpu.memref_slice %arg5[%4, %c0_i32_36] : memref<8x128xf32, #tpu.memory_space<any>> -> memref<1x128xf32, #tpu.memory_space<any>>
    %70 = tpu.memref_slice %arg7[%c0_i32_34] : memref<2x!tpu.dma_semaphore, #tpu.memory_space<semaphore_mem>> -> memref<1x!tpu.dma_semaphore, #tpu.memory_space<semaphore_mem>>
    %71 = tpu.memref_squeeze %70 : memref<1x!tpu.dma_semaphore, #tpu.memory_space<semaphore_mem>> -> memref<!tpu.dma_semaphore, #tpu.memory_space<semaphore_mem>>
    tpu.wait_dma2 semaphore(%71 : memref<!tpu.dma_semaphore, #tpu.memory_space<semaphore_mem>>) src(%68 : memref<1x128xf32, #tpu.memory_space<any>>) dst(%69 : memref<1x128xf32, #tpu.memory_space<any>>)
    %c0_i32_37 = arith.constant 0 : i32
    %c0_i32_38 = arith.constant 0 : i32
    %72 = tpu.memref_slice %arg3[%11, %c0_i32_38] : memref<32x128xf32, #tpu.memory_space<any>> -> memref<1x128xf32, #tpu.memory_space<any>>
    %c0_i32_39 = arith.constant 0 : i32
    %73 = tpu.memref_slice %arg5[%12, %c0_i32_39] : memref<8x128xf32, #tpu.memory_space<any>> -> memref<1x128xf32, #tpu.memory_space<any>>
    %74 = tpu.memref_slice %arg7[%c0_i32_37] : memref<2x!tpu.dma_semaphore, #tpu.memory_space<semaphore_mem>> -> memref<1x!tpu.dma_semaphore, #tpu.memory_space<semaphore_mem>>
    %75 = tpu.memref_squeeze %74 : memref<1x!tpu.dma_semaphore, #tpu.memory_space<semaphore_mem>> -> memref<!tpu.dma_semaphore, #tpu.memory_space<semaphore_mem>>
    tpu.wait_dma2 semaphore(%75 : memref<!tpu.dma_semaphore, #tpu.memory_space<semaphore_mem>>) src(%72 : memref<1x128xf32, #tpu.memory_space<any>>) dst(%73 : memref<1x128xf32, #tpu.memory_space<any>>)
    %c0_i32_40 = arith.constant 0 : i32
    %c0_i32_41 = arith.constant 0 : i32
    %76 = tpu.memref_slice %arg3[%19, %c0_i32_41] : memref<32x128xf32, #tpu.memory_space<any>> -> memref<1x128xf32, #tpu.memory_space<any>>
    %c0_i32_42 = arith.constant 0 : i32
    %77 = tpu.memref_slice %arg5[%20, %c0_i32_42] : memref<8x128xf32, #tpu.memory_space<any>> -> memref<1x128xf32, #tpu.memory_space<any>>
    %78 = tpu.memref_slice %arg7[%c0_i32_40] : memref<2x!tpu.dma_semaphore, #tpu.memory_space<semaphore_mem>> -> memref<1x!tpu.dma_semaphore, #tpu.memory_space<semaphore_mem>>
    %79 = tpu.memref_squeeze %78 : memref<1x!tpu.dma_semaphore, #tpu.memory_space<semaphore_mem>> -> memref<!tpu.dma_semaphore, #tpu.memory_space<semaphore_mem>>
    tpu.wait_dma2 semaphore(%79 : memref<!tpu.dma_semaphore, #tpu.memory_space<semaphore_mem>>) src(%76 : memref<1x128xf32, #tpu.memory_space<any>>) dst(%77 : memref<1x128xf32, #tpu.memory_space<any>>)
    %c0_i32_43 = arith.constant 0 : i32
    %c0_i32_44 = arith.constant 0 : i32
    %80 = tpu.memref_slice %arg3[%27, %c0_i32_44] : memref<32x128xf32, #tpu.memory_space<any>> -> memref<1x128xf32, #tpu.memory_space<any>>
    %c0_i32_45 = arith.constant 0 : i32
    %81 = tpu.memref_slice %arg5[%28, %c0_i32_45] : memref<8x128xf32, #tpu.memory_space<any>> -> memref<1x128xf32, #tpu.memory_space<any>>
    %82 = tpu.memref_slice %arg7[%c0_i32_43] : memref<2x!tpu.dma_semaphore, #tpu.memory_space<semaphore_mem>> -> memref<1x!tpu.dma_semaphore, #tpu.memory_space<semaphore_mem>>
    %83 = tpu.memref_squeeze %82 : memref<1x!tpu.dma_semaphore, #tpu.memory_space<semaphore_mem>> -> memref<!tpu.dma_semaphore, #tpu.memory_space<semaphore_mem>>
    tpu.wait_dma2 semaphore(%83 : memref<!tpu.dma_semaphore, #tpu.memory_space<semaphore_mem>>) src(%80 : memref<1x128xf32, #tpu.memory_space<any>>) dst(%81 : memref<1x128xf32, #tpu.memory_space<any>>)
    %c0_i32_46 = arith.constant 0 : i32
    %c0_i32_47 = arith.constant 0 : i32
    %84 = tpu.memref_slice %arg3[%35, %c0_i32_47] : memref<32x128xf32, #tpu.memory_space<any>> -> memref<1x128xf32, #tpu.memory_space<any>>
    %c0_i32_48 = arith.constant 0 : i32
    %85 = tpu.memref_slice %arg5[%36, %c0_i32_48] : memref<8x128xf32, #tpu.memory_space<any>> -> memref<1x128xf32, #tpu.memory_space<any>>
    %86 = tpu.memref_slice %arg7[%c0_i32_46] : memref<2x!tpu.dma_semaphore, #tpu.memory_space<semaphore_mem>> -> memref<1x!tpu.dma_semaphore, #tpu.memory_space<semaphore_mem>>
    %87 = tpu.memref_squeeze %86 : memref<1x!tpu.dma_semaphore, #tpu.memory_space<semaphore_mem>> -> memref<!tpu.dma_semaphore, #tpu.memory_space<semaphore_mem>>
    tpu.wait_dma2 semaphore(%87 : memref<!tpu.dma_semaphore, #tpu.memory_space<semaphore_mem>>) src(%84 : memref<1x128xf32, #tpu.memory_space<any>>) dst(%85 : memref<1x128xf32, #tpu.memory_space<any>>)
    %c0_i32_49 = arith.constant 0 : i32
    %c0_i32_50 = arith.constant 0 : i32
    %88 = tpu.memref_slice %arg3[%43, %c0_i32_50] : memref<32x128xf32, #tpu.memory_space<any>> -> memref<1x128xf32, #tpu.memory_space<any>>
    %c0_i32_51 = arith.constant 0 : i32
    %89 = tpu.memref_slice %arg5[%44, %c0_i32_51] : memref<8x128xf32, #tpu.memory_space<any>> -> memref<1x128xf32, #tpu.memory_space<any>>
    %90 = tpu.memref_slice %arg7[%c0_i32_49] : memref<2x!tpu.dma_semaphore, #tpu.memory_space<semaphore_mem>> -> memref<1x!tpu.dma_semaphore, #tpu.memory_space<semaphore_mem>>
    %91 = tpu.memref_squeeze %90 : memref<1x!tpu.dma_semaphore, #tpu.memory_space<semaphore_mem>> -> memref<!tpu.dma_semaphore, #tpu.memory_space<semaphore_mem>>
    tpu.wait_dma2 semaphore(%91 : memref<!tpu.dma_semaphore, #tpu.memory_space<semaphore_mem>>) src(%88 : memref<1x128xf32, #tpu.memory_space<any>>) dst(%89 : memref<1x128xf32, #tpu.memory_space<any>>)
    %c0_i32_52 = arith.constant 0 : i32
    %c0_i32_53 = arith.constant 0 : i32
    %92 = tpu.memref_slice %arg3[%51, %c0_i32_53] : memref<32x128xf32, #tpu.memory_space<any>> -> memref<1x128xf32, #tpu.memory_space<any>>
    %c0_i32_54 = arith.constant 0 : i32
    %93 = tpu.memref_slice %arg5[%52, %c0_i32_54] : memref<8x128xf32, #tpu.memory_space<any>> -> memref<1x128xf32, #tpu.memory_space<any>>
    %94 = tpu.memref_slice %arg7[%c0_i32_52] : memref<2x!tpu.dma_semaphore, #tpu.memory_space<semaphore_mem>> -> memref<1x!tpu.dma_semaphore, #tpu.memory_space<semaphore_mem>>
    %95 = tpu.memref_squeeze %94 : memref<1x!tpu.dma_semaphore, #tpu.memory_space<semaphore_mem>> -> memref<!tpu.dma_semaphore, #tpu.memory_space<semaphore_mem>>
    tpu.wait_dma2 semaphore(%95 : memref<!tpu.dma_semaphore, #tpu.memory_space<semaphore_mem>>) src(%92 : memref<1x128xf32, #tpu.memory_space<any>>) dst(%93 : memref<1x128xf32, #tpu.memory_space<any>>)
    %c0_i32_55 = arith.constant 0 : i32
    %c0_i32_56 = arith.constant 0 : i32
    %96 = tpu.memref_slice %arg3[%59, %c0_i32_56] : memref<32x128xf32, #tpu.memory_space<any>> -> memref<1x128xf32, #tpu.memory_space<any>>
    %c0_i32_57 = arith.constant 0 : i32
    %97 = tpu.memref_slice %arg5[%60, %c0_i32_57] : memref<8x128xf32, #tpu.memory_space<any>> -> memref<1x128xf32, #tpu.memory_space<any>>
    %98 = tpu.memref_slice %arg7[%c0_i32_55] : memref<2x!tpu.dma_semaphore, #tpu.memory_space<semaphore_mem>> -> memref<1x!tpu.dma_semaphore, #tpu.memory_space<semaphore_mem>>
    %99 = tpu.memref_squeeze %98 : memref<1x!tpu.dma_semaphore, #tpu.memory_space<semaphore_mem>> -> memref<!tpu.dma_semaphore, #tpu.memory_space<semaphore_mem>>
    tpu.wait_dma2 semaphore(%99 : memref<!tpu.dma_semaphore, #tpu.memory_space<semaphore_mem>>) src(%96 : memref<1x128xf32, #tpu.memory_space<any>>) dst(%97 : memref<1x128xf32, #tpu.memory_space<any>>)
    return
  }
}

</mosaic_0001>

<bundles_post_ra>
// kernel: _fused_gather.1
= control target key start
LH: loop header
LB: loop body
LE: loop exit
PB: predicated region body
PF: predicated region fallthrough
CT: control target
= control target key end

     0   :  { %s531_s0 = inlined_call_operand.vmem [shape: s32[8], index: 0, kind: input, shape index: {}]   ;;  %s532_s2 = inlined_call_operand.hbm [shape: f32[32,128], index: 2, kind: input, shape index: {}]   ;;  %s533_s3 = inlined_call_operand.hbm [shape: f32[9,128], index: 3, kind: input, shape index: {}]   ;;  %s534_s4 = inlined_call_operand.hbm [shape: f32[8,128], index: 4, kind: output, shape index: {0}]   ;;  %s535_s5 = inlined_call_operand.hbm [shape: f32[4,128], index: 5, kind: output, shape index: {1}]   ;;  %s536_s1 = inlined_call_operand.vmem [shape: s32[4], index: 1, kind: input, shape index: {}]  }
   0x1   :  { %s11_s20 = sshll.u32 %s531_s0, 4  ;;  %s15_s23 = sshll.u32 %s536_s1, 4  ;;  %s12_s20 = int_to_ptr.vmem [resolvable:$true] %s11_s20  ;;  %s16_s23 = int_to_ptr.vmem [resolvable:$true] %s15_s23 }
   0x2   :  { %s356_s24 = scalar_lea.vmem %s12_s20, 16  ;;  %p361_p1 = scmp.lt.s32.totalorder %s12_s20, %s12_s20 }
   0x3   :  { %p357_p0 = scmp.ne.s32.totalorder %s12_s20, %s356_s24  ;;  %p362_p2 = scmp.lt.s32.totalorder %s356_s24, %s356_s24 }
   0x5   :  { %p363_p3 = por %p362_p2, %p361_p1 }
   0x7   :  { %p364_p4 = pnand %p363_p3, %p357_p0 }
   0x9   :  { %367 = shalt.err (!%p364_p4)  }
   0xa   :  { %s386_s25 = smov [#allocation4]   ;;  %s368_s26 = scalar_lea.vmem %s16_s23, 16 }
   0xb   :  { %14 = dma.vmem_to_smem %s12_s20, 16, %s386_s25, [#allocation3] }
   0xc   :  { %p369_p5 = scmp.ne.s32.totalorder %s16_s23, %s368_s26  ;;  %p373_p6 = scmp.lt.s32.totalorder %s16_s23, %s16_s23 }
   0xd   :  { %p374_p7 = scmp.lt.s32.totalorder %s368_s26, %s368_s26 }
   0xf   :  { %p375_p8 = por %p374_p7, %p373_p6 }
  0x11   :  { %p376_p9 = pnand %p375_p8, %p369_p5 }
  0x13   :  { %379 = shalt.err (!%p376_p9)  }
  0x14   :  { %s387_s0 = smov [#allocation5]  }
  0x15   :  { %18 = dma.vmem_to_smem %s16_s23, 16, %s387_s0, [#allocation3] }
  0x16   :  { %380 = dma.done.wait [#allocation3], 32 }
  0x17   :  { %381 = vsyncadd [#allocation3], 4294967264 }
  0x18   :  { %20 = sfence }
  0x19   :  { %s22_s1 = sld [smem:[#allocation4]]  ;;  %s388_s6 = smov [#allocation2]  }
  0x1a   :  { %s389_s7 = smov [#allocation6]   ;;  %s390_s8 = smov 0  }
  0x1b   :  { %s288_s14 = scalar_lea.hbm %s534_s4, 16  ;;  %s391_s19 = smov [#allocation8]  }
  0x1c   :  { %s291_s23 = scalar_lea.hbm %s534_s4, 32  ;;  %s393_s12 = smov [#allocation12]  }
  0x1d   :  { %s297_s16 = scalar_lea.hbm %s534_s4, 64  ;;  %s394_s21 = smov [#allocation14]  }
  0x1e   :  { %s300_s25 = scalar_lea.hbm %s534_s4, 80  ;;  %s395_s28 = smov [#allocation16]  }
  0x1f   :  { %s315_s27 = sshll.u32 %s22_s1, 4  ;;  %s392_s1 = smov [#allocation10]  }
  0x20   :  { %s24_s30 = scalar_lea.hbm %s532_s2, %s315_s27  ;;  %s303_s9 = scalar_lea.hbm %s534_s4, 96 }
  0x21   :  { %39 = dma.general %s24_s30, 16, %s534_s4, %s388_s6, %s389_s7, [#allocation7], %s390_s8, 0  }
  0x22   :  { %s316_s11 = sld [smem:[#allocation4 + $0x1]]  ;;  %s294_s30 = scalar_lea.hbm %s534_s4, 48 }
  0x28   :  { %s317_s15 = sshll.u32 %s316_s11, 4 }
  0x29   :  { %s43_s18 = scalar_lea.hbm %s532_s2, %s317_s15 }
  0x2a   :  { %58 = dma.general %s43_s18, 16, %s288_s14, %s388_s6, %s391_s19, [#allocation9], %s390_s8, 0  }
  0x2b   :  { %s318_s20 = sld [smem:[#allocation4 + $0x2]]  ;;  %s396_s14 = smov [#allocation18]  }
  0x2c   :  { %s306_s18 = scalar_lea.hbm %s534_s4, 112  ;;  %s402_s4 = smov [#allocation28]  }
  0x31   :  { %s319_s24 = sshll.u32 %s318_s20, 4 }
  0x32   :  { %s62_s0 = scalar_lea.hbm %s532_s2, %s319_s24 }
  0x33   :  { %77 = dma.general %s62_s0, 16, %s291_s23, %s388_s6, %s392_s1, [#allocation11], %s390_s8, 0  }
  0x34   :  { %s320_s27 = sld [smem:[#allocation4 + $0x3]]  ;;  %s397_s23 = smov [#allocation20]  }
  0x3a   :  { %s321_s7 = sshll.u32 %s320_s27, 4 }
  0x3b   :  { %s81_s11 = scalar_lea.hbm %s532_s2, %s321_s7 }
  0x3c   :  { %96 = dma.general %s81_s11, 16, %s294_s30, %s388_s6, %s393_s12, [#allocation13], %s390_s8, 0  }
  0x3d   :  { %s322_s13 = sld [smem:[#allocation4 + $0x4]] }
  0x43   :  { %s323_s17 = sshll.u32 %s322_s13, 4 }
  0x44   :  { %s100_s20 = scalar_lea.hbm %s532_s2, %s323_s17  ;;  %s214_s17 = scalar_lea.hbm %s535_s5, 32 }
  0x45   :  { %115 = dma.general %s100_s20, 16, %s297_s16, %s388_s6, %s394_s21, [#allocation15], %s390_s8, 0  }
  0x46   :  { %s324_s22 = sld [smem:[#allocation4 + $0x5]] }
  0x4c   :  { %s325_s26 = sshll.u32 %s324_s22, 4 }
  0x4d   :  { %s119_s27 = scalar_lea.hbm %s532_s2, %s325_s26  ;;  %s231_s26 = scalar_lea.hbm %s535_s5, 48 }
  0x4e   :  { %134 = dma.general %s119_s27, 16, %s300_s25, %s388_s6, %s395_s28, [#allocation17], %s390_s8, 0  }
  0x4f   :  { %s326_s29 = sld [smem:[#allocation4 + $0x6]]  ;;  %s398_s27 = smov [#allocation2 + $0x1]  }
  0x50   :  { %s399_s28 = smov [#allocation22]  }
  0x55   :  { %s327_s10 = sshll.u32 %s326_s29, 4 }
  0x56   :  { %s138_s13 = scalar_lea.hbm %s532_s2, %s327_s10 }
  0x57   :  { %153 = dma.general %s138_s13, 16, %s303_s9, %s388_s6, %s396_s14, [#allocation19], %s390_s8, 0  }
  0x58   :  { %s328_s15 = sld [smem:[#allocation4 + $0x7]]  ;;  %s197_s9 = scalar_lea.hbm %s535_s5, 16 }
  0x59   :  { %s400_s13 = smov [#allocation24]  }
  0x5e   :  { %s329_s19 = sshll.u32 %s328_s15, 4 }
  0x5f   :  { %s157_s22 = scalar_lea.hbm %s532_s2, %s329_s19 }
  0x60   :  { %172 = dma.general %s157_s22, 16, %s306_s18, %s388_s6, %s397_s23, [#allocation21], %s390_s8, 0  }
  0x61   :  { %s177_s24 = sld [smem:[#allocation5]]  ;;  %s401_s22 = smov [#allocation26]  }
  0x67   :  { %s330_s25 = sshll.u32 %s177_s24, 4 }
  0x68   :  { %s179_s1 = scalar_lea.hbm %s533_s3, %s330_s25 }
  0x69   :  { %193 = dma.general %s179_s1, 16, %s535_s5, %s398_s27, %s399_s28, [#allocation23], %s390_s8, 0  }
  0x6a   :  { %s331_s30 = sld [smem:[#allocation5 + $0x1]] }
  0x70   :  { %s332_s10 = sshll.u32 %s331_s30, 4 }
  0x71   :  { %s196_s12 = scalar_lea.hbm %s533_s3, %s332_s10 }
  0x72   :  { %210 = dma.general %s196_s12, 16, %s197_s9, %s398_s27, %s400_s13, [#allocation25], %s390_s8, 0  }
  0x73   :  { %s333_s14 = sld [smem:[#allocation5 + $0x2]] }
  0x79   :  { %s334_s18 = sshll.u32 %s333_s14, 4 }
  0x7a   :  { %s213_s21 = scalar_lea.hbm %s533_s3, %s334_s18 }
  0x7b   :  { %227 = dma.general %s213_s21, 16, %s214_s17, %s398_s27, %s401_s22, [#allocation27], %s390_s8, 0  }
  0x7c   :  { %s335_s23 = sld [smem:[#allocation5 + $0x3]] }
  0x82   :  { %s336_s0 = sshll.u32 %s335_s23, 4 }
  0x83   :  { %s230_s29 = scalar_lea.hbm %s533_s3, %s336_s0 }
  0x84   :  { %244 = dma.general %s230_s29, 16, %s231_s26, %s398_s27, %s402_s4, [#allocation29], %s390_s8, 0  }
  0x85   :  { %382 = dma.done.wait [#allocation2 + $0x1], 64 }
  0x86   :  { %383 = vsyncadd [#allocation2 + $0x1], 4294967232 }
  0x87   :  { %384 = dma.done.wait [#allocation2], 128 }
  0x88   :  { %385 = vsyncadd [#allocation2], 4294967168 }
  0x89   :  { %271 = vsyncmov [#allocation2] }
  0x8c   :  { %s272_s30 = vpop.sfrf %271 }
  0x8d   :  { %p337_p10 = scmp.ne.s32.totalorder %s272_s30, 0 }
  0x8f   :  { %276 = shalt.err (%p337_p10)  }
  0x90   :  { %278 = vsyncmov [#allocation2 + $0x1] }
  0x93   :  { %s279_s7 = vpop.sfrf %278 }
  0x94   :  { %p338_p11 = scmp.ne.s32.totalorder %s279_s7, 0 }
  0x96   :  { %283 = shalt.err (%p338_p11)  }

</bundles_post_ra>
